<compile_context>
chip_gen: v7x
topology: tpu7x:2x2x1
jax: 0.10.0
libtpu: 0.0.40
codegen_flags: <defaults>
</compile_context>

<pallas_src>
import functools

import jax
import jax.numpy as jnp
from jax.experimental import pallas as pl
from jax.experimental.pallas import tpu as pltpu

LN_EPS = 1e-5  # torch.nn.LayerNorm default


def _round_up(x: int, m: int) -> int:
    return ((x + m - 1) // m) * m


def _default_vmem_budget() -> int:
    """~85% of physical VMEM (leaves compiler/DMA scratch headroom)."""
    cap = None
    try:
        cap = int(pltpu.get_tpu_info().vmem_capacity_bytes)
    except Exception:
        cap = None
    if not cap or cap <= 0:
        cap = 64 * 1024 * 1024  # safe for every generation (v7x has 64 MiB)
    return int(cap * 0.85)


def _epilogue(y_f32, params_f32, out_true: float):
    """bias add -> LayerNorm (stats over the true Out count) -> SiLU."""
    bias = params_f32[0:1, :]
    gamma = params_f32[1:2, :]
    beta = params_f32[2:3, :]

    y = y_f32 + bias
    # Padded columns are exactly zero (zero weights + zero bias), so one-pass
    # sums divided by the true out_features give exact statistics.
    inv_n = 1.0 / out_true
    mean = jnp.sum(y, axis=-1, keepdims=True) * inv_n
    mean_sq = jnp.sum(y * y, axis=-1, keepdims=True) * inv_n
    var = jnp.maximum(mean_sq - mean * mean, 0.0)  # clamp cancellation -> no NaN

    z = (y - mean) * jax.lax.rsqrt(var + LN_EPS) * gamma + beta
    return z * jax.nn.sigmoid(z)  # SiLU


def _mlp_kernel_resident(x_ref, w_ref, p_ref, o_ref, *, out_true: float):
    """grid = (M tiles,). Full-K weight resident in VMEM; no accumulator."""
    y = jnp.dot(x_ref[...], w_ref[...], preferred_element_type=jnp.float32)
    o_ref[...] = _epilogue(y, p_ref[...], out_true).astype(o_ref.dtype)


def _mlp_kernel_ktiled(x_ref, w_ref, p_ref, o_ref, acc_ref, *, out_true: float):
    """grid = (M tiles, K tiles). K is the reduction ('arbitrary') axis."""
    k = pl.program_id(1)

    @pl.when(k == 0)
    def _init():
        acc_ref[...] = jnp.zeros_like(acc_ref)

    acc_ref[...] += jnp.dot(
        x_ref[...], w_ref[...], preferred_element_type=jnp.float32)

    @pl.when(k == pl.num_programs(1) - 1)
    def _finalize():
        o_ref[...] = _epilogue(acc_ref[...], p_ref[...], out_true).astype(o_ref.dtype)


def _plan_k(In: int, Out: int, xbc: int, wbc: int, budget: int, tile_m_max: int):
    """Choose K tiling from the VMEM budget (tile_m bounded by tile_m_max)."""
    out_pad = _round_up(Out, 128)
    obc = 4  # conservative: f32 output tiles

    def footprint(tile_k: int, resident: bool) -> int:
        return (2 * tile_m_max * tile_k * xbc            # x tiles (dbl buffered)
                + 2 * tile_k * out_pad * wbc             # weight tiles
                + 2 * 8 * out_pad * 4                    # packed params (padded)
                + 2 * tile_m_max * out_pad * obc         # output tiles
                + (0 if resident else tile_m_max * out_pad * 4))  # f32 acc

    in_full = _round_up(In, 128)
    if footprint(in_full, True) <= budget:
        return dict(tile_k=in_full, in_pad=in_full, out_pad=out_pad, resident=True)
    for tk in (2048, 1024, 512, 256):
        if tk < in_full and footprint(tk, False) <= budget:
            return dict(tile_k=tk, in_pad=_round_up(In, tk), out_pad=out_pad,
                        resident=False)
    return dict(tile_k=128, in_pad=in_full, out_pad=out_pad, resident=False)


def prepare_mlp_params(weight, bias, gamma, beta, *,
                       compute_dtype=jnp.bfloat16,
                       vmem_budget: int | None = None,
                       tile_m_max: int = 512):
    """One-time parameter prep. weight: [out_features, in_features] (torch layout)."""
    Out, In = weight.shape
    budget = _default_vmem_budget() if vmem_budget is None else int(vmem_budget)
    xbc = jnp.dtype(compute_dtype).itemsize
    plan = _plan_k(In, Out, xbc, xbc, budget, tile_m_max)
    in_pad, out_pad = plan["in_pad"], plan["out_pad"]

    w_t = weight.T.astype(compute_dtype)                       # [In, Out]
    if (in_pad, out_pad) != (In, Out):
        w_t = jnp.pad(w_t, ((0, in_pad - In), (0, out_pad - Out)))

    params = jnp.stack([bias, gamma, beta]).astype(jnp.float32)  # (3, Out)
    if out_pad != Out:
        params = jnp.pad(params, ((0, 0), (0, out_pad - Out)))

    return dict(weight=w_t, params=params, plan=plan, In=In, Out=Out,
                compute_dtype=jnp.dtype(compute_dtype), budget=budget,
                tile_m_max=tile_m_max)


def mlp_layer(x, prepared):
    """x: [..., in_features] -> SiLU(LayerNorm(x @ W^T + b)): [..., out_features]."""
    In, Out = prepared["In"], prepared["Out"]
    plan = prepared["plan"]
    compute_dtype = prepared["compute_dtype"]
    budget = prepared["budget"]
    tile_m_max = prepared["tile_m_max"]
    in_pad, out_pad, tile_k = plan["in_pad"], plan["out_pad"], plan["tile_k"]

    assert x.shape[-1] == In, "last dim of x must equal in_features"
    lead = x.shape[:-1]
    x2 = x.reshape(-1, In)
    N = x2.shape[0]
    n8 = _round_up(N, 8)

    # --- M tile: large, low row-padding waste, >=2 tiles when possible so the
    # "parallel" axis can shard across v7x's two TensorCores. ---
    if n8 <= tile_m_max:
        tile_m = n8
        if tile_m >= 256:
            half = _round_up((tile_m + 1) // 2, 8)
            if half >= 128:
                tile_m = half
    else:
        cands = [c for c in (512, 384, 256, 128) if c <= tile_m_max] or [128]
        tile_m = min(cands, key=lambda c: (_round_up(n8, c), -c))
    n_pad = _round_up(n8, tile_m)
    m_tiles = n_pad // tile_m

    # Per-call work on x only (cast to compute dtype + pad).
    x_p = x2.astype(compute_dtype)
    if (n_pad, in_pad) != (N, In):
        x_p = jnp.pad(x_p, ((0, n_pad - N), (0, in_pad - In)))

    out_dtype = x.dtype
    xbc = jnp.dtype(compute_dtype).itemsize
    cost = pl.CostEstimate(
        flops=2 * N * In * Out,
        transcendentals=N * Out,
        bytes_accessed=(N * In * xbc + In * Out * xbc + 3 * Out * 4
                        + N * Out * jnp.dtype(out_dtype).itemsize),
    )

    if plan["resident"]:
        out = pl.pallas_call(
            functools.partial(_mlp_kernel_resident, out_true=float(Out)),
            out_shape=jax.ShapeDtypeStruct((n_pad, out_pad), out_dtype),
            grid_spec=pltpu.PrefetchScalarGridSpec(
                num_scalar_prefetch=0,
                grid=(m_tiles,),
                in_specs=[
                    pl.BlockSpec((tile_m, in_pad), lambda i: (i, 0)),     # x
                    pl.BlockSpec((in_pad, out_pad), lambda i: (0, 0)),    # W (resident)
                    pl.BlockSpec((3, out_pad), lambda i: (0, 0)),         # b/gamma/beta
                ],
                out_specs=pl.BlockSpec((tile_m, out_pad), lambda i: (i, 0)),
            ),
            compiler_params=pltpu.CompilerParams(
                dimension_semantics=("parallel",),
                vmem_limit_bytes=budget),
            cost_estimate=cost,
        )(x_p, prepared["weight"], prepared["params"])
    else:
        k_tiles = in_pad // tile_k
        out = pl.pallas_call(
            functools.partial(_mlp_kernel_ktiled, out_true=float(Out)),
            out_shape=jax.ShapeDtypeStruct((n_pad, out_pad), out_dtype),
            grid_spec=pltpu.PrefetchScalarGridSpec(
                num_scalar_prefetch=0,
                grid=(m_tiles, k_tiles),
                in_specs=[
                    pl.BlockSpec((tile_m, tile_k), lambda i, k: (i, k)),   # x
                    pl.BlockSpec((tile_k, out_pad), lambda i, k: (k, 0)),  # W
                    pl.BlockSpec((3, out_pad), lambda i, k: (0, 0)),       # b/gamma/beta
                ],
                out_specs=pl.BlockSpec((tile_m, out_pad), lambda i, k: (i, 0)),
                scratch_shapes=[pltpu.VMEM((tile_m, out_pad), jnp.float32)],
            ),
            compiler_params=pltpu.CompilerParams(
                dimension_semantics=("parallel", "arbitrary"),
                vmem_limit_bytes=budget),
            cost_estimate=cost,
        )(x_p, prepared["weight"], prepared["params"])

    if (n_pad, out_pad) != (N, Out):
        out = out[:N, :Out]
    return out.reshape(lead + (Out,))


if __name__ == "__main__":
    # Small shapes consistent with MLPLayer(in_features=32, out_features=128).
    N, IN_FEATURES, OUT_FEATURES = 16, 32, 128

    key = jax.random.PRNGKey(0)
    kx, kw, kb = jax.random.split(key, 3)

    x = jax.random.normal(kx, (N, IN_FEATURES), dtype=jnp.float32)

    # Deterministic synthetic params (torch.nn.Linear-style uniform init).
    bound = 1.0 / (IN_FEATURES ** 0.5)
    weight = jax.random.uniform(
        kw, (OUT_FEATURES, IN_FEATURES), minval=-bound, maxval=bound,
        dtype=jnp.float32)
    bias = jax.random.uniform(
        kb, (OUT_FEATURES,), minval=-bound, maxval=bound, dtype=jnp.float32)
    # torch.nn.LayerNorm defaults: gamma=1, beta=0.
    gamma = jnp.ones((OUT_FEATURES,), dtype=jnp.float32)
    beta = jnp.zeros((OUT_FEATURES,), dtype=jnp.float32)

    prepared = prepare_mlp_params(weight, bias, gamma, beta,
                                  compute_dtype=jnp.bfloat16)
    out = mlp_layer(x, prepared)
    out = jax.block_until_ready(out)

    # Reference in plain JAX using the same bf16 matmul operands + f32 accum
    # (matches the kernel's compute precision).
    xb = x.astype(jnp.bfloat16)
    wb = weight.T.astype(jnp.bfloat16)
    y_ref = jnp.dot(xb, wb, preferred_element_type=jnp.float32) + bias
    mu = y_ref.mean(-1, keepdims=True)
    var = ((y_ref - mu) ** 2).mean(-1, keepdims=True)
    z_ref = (y_ref - mu) / jnp.sqrt(var + LN_EPS) * gamma + beta
    ref = z_ref * jax.nn.sigmoid(z_ref)

    assert out.shape == (N, OUT_FEATURES)
    assert bool(jnp.all(jnp.isfinite(out))), "non-finite output"
    assert jnp.allclose(out, ref, atol=2e-3, rtol=2e-3), "mismatch vs reference"

    print("KERNEL_OK")
</pallas_src>

<mosaic_0001>
module attributes {stable_mosaic.version = 11 : i64} {
  func.func @_mlp_kernel_resident(%arg0: i32, %arg1: memref<16x128xbf16, #tpu.memory_space<vmem>>, %arg2: memref<128x128xbf16, #tpu.memory_space<vmem>>, %arg3: memref<3x128xf32, #tpu.memory_space<vmem>>, %arg4: memref<16x128xf32, #tpu.memory_space<vmem>>) attributes {dimension_semantics = [#tpu.dimension_semantics<parallel>], iteration_bounds = array<i64: 1>, scalar_prefetch = 0 : i64, scratch_operands = 0 : i64, tpu.core_type = #tpu.core_type<tc>, window_params = [{transform_indices = @transform_0, window_bounds = array<i64: 16, 128>}, {pipeline_mode = #tpu.pipeline_mode<synchronous>, transform_indices = @transform_1, window_bounds = array<i64: 128, 128>}, {pipeline_mode = #tpu.pipeline_mode<synchronous>, transform_indices = @transform_2, window_bounds = array<i64: 3, 128>}, {transform_indices = @transform_3, window_bounds = array<i64: 16, 128>}]} {
    %c0 = arith.constant 0 : index
    %c0_0 = arith.constant 0 : index
    %0 = vector.load %arg1[%c0, %c0_0] : memref<16x128xbf16, #tpu.memory_space<vmem>>, vector<16x128xbf16>
    %c0_1 = arith.constant 0 : index
    %c0_2 = arith.constant 0 : index
    %1 = vector.load %arg2[%c0_1, %c0_2] : memref<128x128xbf16, #tpu.memory_space<vmem>>, vector<128x128xbf16>
    %cst = arith.constant dense<0.000000e+00> : vector<16x128xf32>
    %2 = tpu.matmul %0, %1, %cst {dimension_numbers = #tpu.dot_dimension_numbers<[1], [0], [0], [1], [0, 0, 1, 1], [], []>} : vector<16x128xbf16>, vector<128x128xbf16>, vector<16x128xf32> -> vector<16x128xf32>
    %c0_3 = arith.constant 0 : index
    %c0_4 = arith.constant 0 : index
    %3 = vector.load %arg3[%c0_3, %c0_4] : memref<3x128xf32, #tpu.memory_space<vmem>>, vector<3x128xf32>
    %4 = vector.extract_strided_slice %3 {offsets = [0, 0], sizes = [1, 128], strides = [1, 1]} : vector<3x128xf32> to vector<1x128xf32>
    %5 = vector.extract_strided_slice %3 {offsets = [1, 0], sizes = [1, 128], strides = [1, 1]} : vector<3x128xf32> to vector<1x128xf32>
    %6 = vector.extract_strided_slice %3 {offsets = [2, 0], sizes = [1, 128], strides = [1, 1]} : vector<3x128xf32> to vector<1x128xf32>
    %7 = vector.broadcast %4 : vector<1x128xf32> to vector<16x128xf32>
    %8 = arith.addf %2, %7 : vector<16x128xf32>
    %cst_5 = arith.constant dense<0.000000e+00> : vector<16xf32>
    %9 = vector.multi_reduction <add>, %8, %cst_5 [1] : vector<16x128xf32> to vector<16xf32>
    %10 = vector.shape_cast %9 : vector<16xf32> to vector<16x1xf32>
    %cst_6 = arith.constant 7.812500e-03 : f32
    %11 = vector.broadcast %cst_6 : f32 to vector<16x1xf32>
    %12 = arith.mulf %10, %11 : vector<16x1xf32>
    %13 = arith.mulf %8, %8 : vector<16x128xf32>
    %cst_7 = arith.constant dense<0.000000e+00> : vector<16xf32>
    %14 = vector.multi_reduction <add>, %13, %cst_7 [1] : vector<16x128xf32> to vector<16xf32>
    %15 = vector.shape_cast %14 : vector<16xf32> to vector<16x1xf32>
    %cst_8 = arith.constant 7.812500e-03 : f32
    %16 = vector.broadcast %cst_8 : f32 to vector<16x1xf32>
    %17 = arith.mulf %15, %16 : vector<16x1xf32>
    %18 = arith.mulf %12, %12 : vector<16x1xf32>
    %19 = arith.subf %17, %18 : vector<16x1xf32>
    %cst_9 = arith.constant 0.000000e+00 : f32
    %20 = vector.broadcast %cst_9 : f32 to vector<16x1xf32>
    %21 = arith.maximumf %19, %20 : vector<16x1xf32>
    %22 = vector.broadcast %12 : vector<16x1xf32> to vector<16x128xf32>
    %23 = arith.subf %8, %22 : vector<16x128xf32>
    %cst_10 = arith.constant 9.99999974E-6 : f32
    %24 = vector.broadcast %cst_10 : f32 to vector<16x1xf32>
    %25 = arith.addf %21, %24 : vector<16x1xf32>
    %26 = math.rsqrt %25 : vector<16x1xf32>
    %27 = vector.broadcast %26 : vector<16x1xf32> to vector<16x128xf32>
    %28 = arith.mulf %23, %27 : vector<16x128xf32>
    %29 = vector.broadcast %5 : vector<1x128xf32> to vector<16x128xf32>
    %30 = arith.mulf %28, %29 : vector<16x128xf32>
    %31 = vector.broadcast %6 : vector<1x128xf32> to vector<16x128xf32>
    %32 = arith.addf %30, %31 : vector<16x128xf32>
    %33 = arith.negf %32 : vector<16x128xf32>
    %34 = math.exp %33 : vector<16x128xf32>
    %cst_11 = arith.constant 1.000000e+00 : f32
    %35 = vector.broadcast %cst_11 : f32 to vector<16x128xf32>
    %36 = arith.addf %35, %34 : vector<16x128xf32>
    %37 = arith.divf %35, %36 : vector<16x128xf32>
    %38 = arith.mulf %32, %37 : vector<16x128xf32>
    %c0_12 = arith.constant 0 : index
    %c0_13 = arith.constant 0 : index
    %39 = vector.load %arg4[%c0_12, %c0_13] : memref<16x128xf32, #tpu.memory_space<vmem>>, vector<16x128xf32>
    tpu.vector_store %arg4[%c0_12, %c0_13], %38 {strides = array<i32>} : memref<16x128xf32, #tpu.memory_space<vmem>>, vector<16x128xf32>,
    return
  }
  func.func @transform_0(%arg0: i32) -> (i32, i32) {
    %c0_i32 = arith.constant 0 : i32
    %c0_i32_0 = arith.constant 0 : i32
    return %arg0, %c0_i32 : i32, i32
  }
  func.func @transform_1(%arg0: i32) -> (i32, i32) {
    %c0_i32 = arith.constant 0 : i32
    %c0_i32_0 = arith.constant 0 : i32
    %c0_i32_1 = arith.constant 0 : i32
    return %c0_i32, %c0_i32_0 : i32, i32
  }
  func.func @transform_2(%arg0: i32) -> (i32, i32) {
    %c0_i32 = arith.constant 0 : i32
    %c0_i32_0 = arith.constant 0 : i32
    %c0_i32_1 = arith.constant 0 : i32
    return %c0_i32, %c0_i32_0 : i32, i32
  }
  func.func @transform_3(%arg0: i32) -> (i32, i32) {
    %c0_i32 = arith.constant 0 : i32
    %c0_i32_0 = arith.constant 0 : i32
    return %arg0, %c0_i32 : i32, i32
  }
}

</mosaic_0001>

<bundles_post_ra>
// kernel: tpu_custom_call.1
= control target key start
LH: loop header
LB: loop body
LE: loop exit
PB: predicated region body
PF: predicated region fallthrough
CT: control target
= control target key end

     0   :  { %8 = vsyncpa [#allocation3], 0  ;;  %s446_s0 = inlined_call_operand.hbm [shape: bf16[16,128], index: 0, kind: input, shape index: {}]   ;;  %s447_s1 = inlined_call_operand.hbm [shape: bf16[128,128], index: 1, kind: input, shape index: {}]   ;;  %s448_s2 = inlined_call_operand.vmem [shape: f32[3,128], index: 2, kind: input, shape index: {}]   ;;  %s449_s3 = inlined_call_operand.hbm [shape: f32[16,128], index: 3, kind: output, shape index: {}]  }
   0x1   :  { %9 = vsyncpa [#allocation6], 0 }
   0x2   :  { %10 = vsyncpa [#allocation4], 0  ;;  %s378_s12 = smov [#allocation2]   ;;  %s306_s16 = scalar_lea.hbm %s446_s0, 128 }
   0x3   :  { %s16_s13 = sshll.u32 %s378_s12, 4  ;;  %p307_p0 = scmp.ne.s32.totalorder %s446_s0, %s306_s16  ;;  %s17_s13 = int_to_ptr.vmem [resolvable:$true] %s16_s13 }
   0x4   :  { %p310_p1 = scmp.lt.u32.totalorder %s306_s16, %s446_s0 }
   0x6   :  { %p312_p2 = pnand %p310_p1, %p307_p0 }
   0x8   :  { %315 = shalt.err (!%p312_p2)
}
   0x9   :  { %s316_s21 = scalar_lea.vmem %s17_s13, 128  ;;  %p321_p4 = scmp.lt.s32.totalorder %s17_s13, %s17_s13 }
   0xa   :  { %p317_p3 = scmp.ne.s32.totalorder %s17_s13, %s316_s21  ;;  %p322_p5 = scmp.lt.s32.totalorder %s316_s21, %s316_s21 }
   0xc   :  { %p323_p6 = por %p322_p5, %p321_p4 }
   0xe   :  { %p324_p7 = pnand %p323_p6, %p317_p3 }
  0x10   :  { %327 = shalt.err (!%p324_p7)
}
  0x11   :  { %s379_s22 = smov 64   ;;  %s380_s23 = smov 4  }
  0x12   :  { %22 = dma.hbm_to_vmem [thread:$0]  %s446_s0, 128, %s17_s13, [#allocation3], %s379_s22, %s379_s22, %s380_s23  }
  0x13   :  { %s381_s26 = smov [#allocation5]   ;;  %s328_s30 = scalar_lea.hbm %s447_s1, 1024 }
  0x14   :  { %s28_s27 = sshll.u32 %s381_s26, 4  ;;  %p329_p8 = scmp.ne.s32.totalorder %s447_s1, %s328_s30  ;;  %s29_s27 = int_to_ptr.vmem [resolvable:$true] %s28_s27 }
  0x15   :  { %p332_p9 = scmp.lt.u32.totalorder %s328_s30, %s447_s1 }
  0x17   :  { %p334_p10 = pnand %p332_p9, %p329_p8 }
  0x19   :  { %337 = shalt.err (!%p334_p10)
}
  0x1a   :  { %s338_s8 = scalar_lea.vmem %s29_s27, 1024  ;;  %p343_p12 = scmp.lt.s32.totalorder %s29_s27, %s29_s27 }
  0x1b   :  { %p339_p11 = scmp.ne.s32.totalorder %s29_s27, %s338_s8  ;;  %p344_p13 = scmp.lt.s32.totalorder %s338_s8, %s338_s8 }
  0x1d   :  { %p345_p0 = por %p344_p13, %p343_p12 }
  0x1f   :  { %p346_p1 = pnand %p345_p0, %p339_p11 }
  0x21   :  { %349 = shalt.err (!%p346_p1)
}
  0x22   :  { %34 = dma.hbm_to_vmem [thread:$0]  %s447_s1, 1024, %s29_s27, [#allocation6], %s379_s22, %s379_s22, %s380_s23  }
  0x23   :  { %372 = dma.done.wait [#allocation3], 128  }
  0x24   :  { %373 = vsyncadd [#allocation3], 4294967168 }
  0x25   :  { %374 = dma.done.wait [#allocation6], 1024  }
  0x26   :  { %375 = vsyncadd [#allocation6], 4294966272  ;;  %v382_v0 = vmov 0.0   ;;  %vm383_vm0 = vmmov 0   ;;  %v285_v1 = vld [vmem:[#allocation5] sm:$0xff]   ;;  %v286_v2 = vld [vmem:[#allocation5 + $0x8] sm:$0xff]   ;;  %v63_v10 = vlaneseq }
  0x27   :  { %256 = vmatprep.subr.bf16.mxu0 %v382_v0  ;;  %272 = vmatprep.mubr.msk.bf16.mxu0 %vm383_vm0, %v382_v0  ;;  %v287_v3 = vld [vmem:[#allocation5 + $0x10] sm:$0xff]   ;;  %v288_v4 = vld [vmem:[#allocation5 + $0x18] sm:$0xff]   ;;  %v289_v5 = vld [vmem:[#allocation5 + $0x20] sm:$0xff]  }
  0x28   :  { %257 = vmatpush3.bf16.msra.mxu0 %v285_v1  ;;  %v290_v6 = vld [vmem:[#allocation5 + $0x28] sm:$0xff]   ;;  %v291_v7 = vld [vmem:[#allocation5 + $0x30] sm:$0xff]   ;;  %v292_v8 = vld [vmem:[#allocation5 + $0x38] sm:$0xff]   ;;  %v64_v11 = vshrl.u32 %v63_v10, 7 }
  0x29   :  { %258 = vmatprep.subr.bf16.mxu0 %v382_v0  ;;  %v293_v9 = vld [vmem:[#allocation2] sm:$0xff]  }
  0x2a   :  { %v65_v12 = vsub.s32 0, %v64_v11  ;;  %v62_v13 = vld [vmem:[%s448_s2] sm:$0x7]  ;;  %v192_v39 = vsub.s32 1, %v64_v11  ;;  %v198_v40 = vsub.s32 2, %v64_v11  ;;  %s384_s2 = smov [#allocation7]  }
  0x2b   :  { %s223_s11 = sshll.u32 %s384_s2, 4  ;;  %s224_s11 = int_to_ptr.vmem [resolvable:$true] %s223_s11 }
  0x2c   :  { %259 = vmatpush3.bf16.msra.mxu0 %v286_v2  ;;  %v66_v14 = vrot.slane %v62_v13, %v65_v12  ;;  %v193_v41 = vrot.slane %v62_v13, %v192_v39  ;;  %v199_v44 = vrot.slane %v62_v13, %v198_v40  ;;  %s350_s12 = scalar_lea.vmem %s224_s11, 256  ;;  %p355_p3 = scmp.lt.s32.totalorder %s224_s11, %s224_s11 }
  0x2d   :  { %260 = vmatprep.subr.bf16.mxu0 %v382_v0  ;;  %p351_p2 = scmp.ne.s32.totalorder %s224_s11, %s350_s12  ;;  %p356_p4 = scmp.lt.s32.totalorder %s350_s12, %s350_s12 }
  0x2f   :  { %p357_p5 = por %p356_p4, %p355_p3 }
  0x30   :  { %261 = vmatpush3.bf16.msra.mxu0 %v287_v3 }
  0x31   :  { %262 = vmatprep.subr.bf16.mxu0 %v382_v0  ;;  %p358_p6 = pnand %p357_p5, %p351_p2 }
  0x34   :  { %263 = vmatpush3.bf16.msra.mxu0 %v288_v4 }
  0x35   :  { %264 = vmatprep.subr.bf16.mxu0 %v382_v0 }
  0x38   :  { %265 = vmatpush3.bf16.msra.mxu0 %v289_v5 }
  0x39   :  { %266 = vmatprep.subr.bf16.mxu0 %v382_v0 }
  0x3c   :  { %267 = vmatpush3.bf16.msra.mxu0 %v290_v6 }
  0x3d   :  { %268 = vmatprep.subr.bf16.mxu0 %v382_v0 }
  0x40   :  { %269 = vmatpush3.bf16.msra.mxu0 %v291_v7 }
  0x41   :  { %270 = vmatprep.subr.bf16.mxu0 %v382_v0 }
  0x44   :  { %271 = vmatpush3.bf16.msra.mxu0 %v292_v8 }
  0x47   :  { %273 = vmatmul.mubr.bf16.vlgmr.msra.gmra.mrb[0].mxu0 %v293_v9 }
 0x11a   :  { %v155_v15 = vpop.f32.mrb[0].mxu0 }
 0x11b   :  { %v156_v16 = vadd.f32 %v155_v15, %v66_v14  ;;  %v274_v17 = vpop.f32.mrb[1].mxu0 }
 0x11c   :  { %v158_v18 = vpop.f32.mrb[2].mxu0 }
 0x11d   :  { %v159_v19 = vadd.f32 %v158_v18, %v66_v14  ;;  %162 = vadd.xlane.f32.xlu0 %v156_v16  ;;  %v275_v20 = vpop.f32.mrb[3].mxu0  ;;  %v168_v21 = vmul.f32 %v156_v16, %v156_v16 }
 0x11f   :  { %170 = vadd.xlane.f32.xlu1 %v168_v21  ;;  %v169_v22 = vmul.f32 %v159_v19, %v159_v19 }
 0x121   :  { %164 = vadd.xlane.f32.xlu0 %v159_v19 }
 0x123   :  { %172 = vadd.xlane.f32.xlu1 %v169_v22 }
 0x1aa   :  { %v163_v23 = vpop.xlane.xlu0 %162 }
 0x1ab   :  { %v166_v24 = vmul.f32 0.0078125, %v163_v23 }
 0x1ac   :  { %v171_v25 = vpop.xlane.xlu1 %170 }
 0x1ad   :  { %v176_v26 = vmul.f32 %v166_v24, %v166_v24  ;;  %v174_v27 = vmul.f32 0.0078125, %v171_v25  ;;  %v182_v42 = vsub.f32 %v156_v16, %v166_v24 }
 0x1ae   :  { %v165_v28 = vpop.xlane.xlu0 %164 }
 0x1af   :  { %v178_v29 = vsub.f32 %v174_v27, %v176_v26  ;;  %v167_v30 = vmul.f32 0.0078125, %v165_v28 }
 0x1b0   :  { %v173_v31 = vpop.xlane.xlu1 %172 }
 0x1b1   :  { %v180_v32 = vmax.f32 %v178_v29, 0.0  ;;  %v177_v33 = vmul.f32 %v167_v30, %v167_v30  ;;  %v175_v34 = vmul.f32 0.0078125, %v173_v31  ;;  %v183_v46 = vsub.f32 %v159_v19, %v167_v30 }
 0x1b3   :  { %v184_v35 = vadd.f32 1e-05, %v180_v32  ;;  %v179_v36 = vsub.f32 %v175_v34, %v177_v33 }
 0x1b5   :  { %294 = vrsqrt.f32 %v184_v35  ;;  %v181_v37 = vmax.f32 %v179_v36, 0.0 }
 0x1b7   :  { %v185_v38 = vadd.f32 1e-05, %v181_v37 }
 0x1b9   :  { %296 = vrsqrt.f32 %v185_v38 }
 0x1bf   :  { %v295_v43 = vpop.eup %294 }
 0x1c0   :  { %v188_v45 = vmul.f32 %v295_v43, %v182_v42 }
 0x1c2   :  { %v194_v47 = vmul.f32 %v193_v41, %v188_v45 }
 0x1c3   :  { %v297_v48 = vpop.eup %296 }
 0x1c4   :  { %v189_v49 = vmul.f32 %v297_v48, %v183_v46  ;;  %v200_v50 = vadd.f32 %v199_v44, %v194_v47 }
 0x1c6   :  { %v195_v51 = vmul.f32 %v193_v41, %v189_v49  ;;  %v245_v52 = vmul.f32 -1.442695, %v200_v50 }
 0x1c8   :  { %v201_v53 = vadd.f32 %v199_v44, %v195_v51  ;;  %298 = vpow2.f32 %v245_v52 }
 0x1ca   :  { %v246_v54 = vmul.f32 -1.442695, %v201_v53 }
 0x1cc   :  { %300 = vpow2.f32 %v246_v54 }
 0x1d2   :  { %v299_v55 = vpop.eup %298 }
 0x1d3   :  { %v208_v56 = vadd.f32 1.0, %v299_v55 }
 0x1d5   :  { %302 = vrcp.f32 %v208_v56 }
 0x1d6   :  { %v301_v57 = vpop.eup %300 }
 0x1d7   :  { %v209_v58 = vadd.f32 1.0, %v301_v57 }
 0x1d9   :  { %304 = vrcp.f32 %v209_v58 }
 0x1df   :  { %v303_v59 = vpop.eup %302 }
 0x1e0   :  { %v214_v60 = vmul.f32 %v303_v59, %v200_v50 }
 0x1e2   :  { %216 = vst [vmem:[#allocation7] sm:$0xff] %v214_v60 }
 0x1e3   :  { %v305_v61 = vpop.eup %304 }
 0x1e4   :  { %v215_v62 = vmul.f32 %v305_v61, %v201_v53 }
 0x1e6   :  { %217 = vst [vmem:[#allocation7 + $0x8] sm:$0xff] %v215_v62 }
 0x1e7   :  { %361 = shalt.err (!%p358_p6)
}
 0x1e8   :  { %s362_s15 = scalar_lea.hbm %s449_s3, 256 }
 0x1e9   :  { %p363_p7 = scmp.ne.s32.totalorder %s449_s3, %s362_s15  ;;  %p366_p8 = scmp.lt.u32.totalorder %s362_s15, %s449_s3 }
 0x1eb   :  { %p368_p9 = pnand %p366_p8, %p363_p7 }
 0x1ed   :  { %371 = shalt.err (!%p368_p9)
}
 0x1ee   :  { %s385_s20 = smov 128   ;;  %s386_s21 = smov 8  }
 0x1ef   :  { %229 = dma.vmem_to_hbm [thread:$0]  %s224_s11, 256, %s449_s3, [#allocation4], %s385_s20, %s385_s20, %s386_s21  }
 0x1f0   :  { %376 = dma.done.wait [#allocation4], 256  }
 0x1f1   :  { %377 = vsyncadd [#allocation4], 4294967040 }
 0x1f2   :  { %233 = vsyncpa [#allocation3], 1 }
 0x1f3   :  { %234 = vsyncpa [#allocation6], 1 }
 0x1f4   :  { %235 = vsyncpa [#allocation4], 1 }

</bundles_post_ra>
